<compile_context>
chip_gen: v5e
topology: v5e:2x2
jax: 0.10.0
libtpu: 0.0.40
codegen_flags: <defaults>
</compile_context>

<pallas_src>
import functools
import math

import jax
import jax.numpy as jnp
from jax.experimental import pallas as pl
from jax.experimental.pallas import tpu as pltpu


# ----------------------------------------------------------------------------
# Tile / VMEM helpers
# ----------------------------------------------------------------------------

def _pick_tile(dim, target, gran):
    """Largest multiple of `gran` that divides `dim` and is <= target; else the full dim."""
    if dim <= target:
        return dim
    best = None
    t = gran
    while t <= target:
        if dim % t == 0:
            best = t
        t += gran
    return best if best is not None else dim


def _default_vmem_limit():
    """Per-generation VMEM budget: ~96 MiB on 128 MiB parts (v5e/v6e), ~48 MiB on v7x (64 MiB)."""
    try:
        cap = pltpu.get_tpu_info().vmem_capacity_bytes
    except Exception:
        cap = 64 * 1024 * 1024  # conservative fallback
    return min(96 * 1024 * 1024, (3 * cap) // 4)


_VMEM_LIMIT = _default_vmem_limit()


# ----------------------------------------------------------------------------
# Pallas kernels
# ----------------------------------------------------------------------------

def _linear_kernel(x_ref, w_ref, b_ref, o_ref, acc_ref, *, act):
    """Tiled y = x @ w + b (w stored (in, out)), optional activation. f32 accumulation."""
    @pl.when(pl.program_id(2) == 0)
    def _():
        acc_ref[...] = jnp.zeros_like(acc_ref)

    acc_ref[...] += jnp.dot(x_ref[...], w_ref[...], preferred_element_type=jnp.float32)

    @pl.when(pl.program_id(2) == pl.num_programs(2) - 1)
    def _():
        y = acc_ref[...] + b_ref[...]          # bias / activation in f32 (v5e-safe)
        if act == "tanh":
            y = jnp.tanh(y)
        elif act == "relu":
            y = jnp.maximum(y, 0.0)
        elif act == "gelu":
            y = jax.nn.gelu(y, approximate=True)
        o_ref[...] = y.astype(o_ref.dtype)


def linear(x, w, b, act="none", out_dtype=jnp.bfloat16, tm=512, tn=1024, tk=1536):
    """y = x @ w + b with large, generation-safe tiles.

    tn defaults to the full output width (<=1024), tk to the full reduction depth when
    K <= 1024, so for H-sized projections the grid has a single reduction step and the
    output tile is never revisited from HBM.
    """
    M, K = x.shape
    N = w.shape[1]
    tm = _pick_tile(M, tm, 16)              # bf16 packs 2 rows / sublane -> multiple of 16
    tn = _pick_tile(N, tn, 128)
    tk = K if K <= 1024 else _pick_tile(K, tk, 128)
    grid = (M // tm, N // tn, K // tk)
    return pl.pallas_call(
        functools.partial(_linear_kernel, act=act),
        out_shape=jax.ShapeDtypeStruct((M, N), out_dtype),
        grid=grid,
        in_specs=[pl.BlockSpec((tm, tk), lambda i, j, k: (i, k)),
                  pl.BlockSpec((tk, tn), lambda i, j, k: (k, j)),
                  pl.BlockSpec((1, tn), lambda i, j, k: (0, j))],
        out_specs=pl.BlockSpec((tm, tn), lambda i, j, k: (i, j)),
        scratch_shapes=[pltpu.VMEM((tm, tn), jnp.float32)],
        compiler_params=pltpu.CompilerParams(
            dimension_semantics=("parallel", "parallel", "arbitrary"),
            vmem_limit_bytes=_VMEM_LIMIT),
    )(x.astype(jnp.bfloat16), w.astype(jnp.bfloat16),
      b.reshape(1, N).astype(jnp.float32))


def _linear_add_ln_kernel(x_ref, w_ref, b_ref, r_ref, g_ref, beta_ref, o_ref, acc_ref, *, eps):
    """Fused: LayerNorm((x @ w + b) + residual). tn == full N so rows are complete."""
    @pl.when(pl.program_id(1) == 0)
    def _():
        acc_ref[...] = jnp.zeros_like(acc_ref)

    acc_ref[...] += jnp.dot(x_ref[...], w_ref[...], preferred_element_type=jnp.float32)

    @pl.when(pl.program_id(1) == pl.num_programs(1) - 1)
    def _():
        y = acc_ref[...] + b_ref[...] + r_ref[...].astype(jnp.float32)
        mu = jnp.mean(y, axis=-1, keepdims=True)
        var = jnp.mean(jnp.square(y - mu), axis=-1, keepdims=True)
        o_ref[...] = ((y - mu) * jax.lax.rsqrt(var + eps) * g_ref[...]
                      + beta_ref[...]).astype(o_ref.dtype)


def linear_add_ln(x, w, b, residual, g, beta, eps=1e-5, out_dtype=jnp.bfloat16,
                  tm=512, tk=1536):
    """Matmul + bias with the residual-add + LayerNorm folded into the finalize epilogue."""
    M, K = x.shape
    N = w.shape[1]
    tm = _pick_tile(M, tm, 16)
    tk = K if K <= 1024 else _pick_tile(K, tk, 128)
    grid = (M // tm, K // tk)
    return pl.pallas_call(
        functools.partial(_linear_add_ln_kernel, eps=eps),
        out_shape=jax.ShapeDtypeStruct((M, N), out_dtype),
        grid=grid,
        in_specs=[pl.BlockSpec((tm, tk), lambda i, k: (i, k)),
                  pl.BlockSpec((tk, N), lambda i, k: (k, 0)),
                  pl.BlockSpec((1, N), lambda i, k: (0, 0)),
                  pl.BlockSpec((tm, N), lambda i, k: (i, 0)),
                  pl.BlockSpec((1, N), lambda i, k: (0, 0)),
                  pl.BlockSpec((1, N), lambda i, k: (0, 0))],
        out_specs=pl.BlockSpec((tm, N), lambda i, k: (i, 0)),
        scratch_shapes=[pltpu.VMEM((tm, N), jnp.float32)],
        compiler_params=pltpu.CompilerParams(
            dimension_semantics=("parallel", "arbitrary"),
            vmem_limit_bytes=_VMEM_LIMIT),
    )(x.astype(jnp.bfloat16), w.astype(jnp.bfloat16), b.reshape(1, N).astype(jnp.float32),
      residual.astype(jnp.bfloat16), g.reshape(1, N).astype(jnp.float32),
      beta.reshape(1, N).astype(jnp.float32))


def _layernorm_kernel(x_ref, g_ref, b_ref, o_ref, *, eps):
    x = x_ref[...].astype(jnp.float32)
    mu = jnp.mean(x, axis=-1, keepdims=True)
    var = jnp.mean(jnp.square(x - mu), axis=-1, keepdims=True)
    y = (x - mu) * jax.lax.rsqrt(var + eps) * g_ref[...] + b_ref[...]
    o_ref[...] = y.astype(o_ref.dtype)


def layernorm(x, g, b, eps=1e-5, out_dtype=jnp.bfloat16):
    M, H = x.shape
    tm = _pick_tile(M, 512, 16)
    return pl.pallas_call(
        functools.partial(_layernorm_kernel, eps=eps),
        out_shape=jax.ShapeDtypeStruct((M, H), out_dtype),
        grid=(M // tm,),
        in_specs=[pl.BlockSpec((tm, H), lambda i: (i, 0)),
                  pl.BlockSpec((1, H), lambda i: (0, 0)),
                  pl.BlockSpec((1, H), lambda i: (0, 0))],
        out_specs=pl.BlockSpec((tm, H), lambda i: (i, 0)),
        compiler_params=pltpu.CompilerParams(dimension_semantics=("parallel",)),
    )(x, g.reshape(1, H).astype(jnp.float32), b.reshape(1, H).astype(jnp.float32))


def _mha_kernel(q_ref, k_ref, v_ref, m_ref, o_ref, *, scale):
    """One (batch, head) pair per grid step. Head-major tiles: every slice is lane-aligned,
    and each head writes its own output block (no concat, bounded live ranges)."""
    S, hd = q_ref.shape[2], q_ref.shape[3]
    q = q_ref[...].reshape(S, hd)
    k = k_ref[...].reshape(S, hd)
    v = v_ref[...].reshape(S, hd)
    mask = m_ref[...].reshape(1, S)                 # f32 additive mask, broadcast over queries
    s = jax.lax.dot_general(q, k, (((1,), (1,)), ((), ())),
                            preferred_element_type=jnp.float32) * scale + mask   # (S, S) f32
    s = s - jnp.max(s, axis=-1, keepdims=True)
    p = jnp.exp(s)
    p = p * pl.reciprocal(jnp.sum(p, axis=-1, keepdims=True), approx=True)
    ctx = jnp.dot(p.astype(v.dtype), v, preferred_element_type=jnp.float32)       # (S, hd)
    o_ref[...] = ctx.reshape(1, 1, S, hd).astype(o_ref.dtype)


def mha(q, k, v, mask, *, scale):
    """q, k, v: (B, nh, S, hd) head-major (built by XLA outside the kernel). mask: (B, 1, S)."""
    B, nh, S, hd = q.shape
    spec = pl.BlockSpec((1, 1, S, hd), lambda b, h: (b, h, 0, 0))
    return pl.pallas_call(
        functools.partial(_mha_kernel, scale=scale),
        out_shape=jax.ShapeDtypeStruct((B, nh, S, hd), jnp.bfloat16),
        grid=(B, nh),
        in_specs=[spec, spec, spec,
                  pl.BlockSpec((1, 1, S), lambda b, h: (b, 0, 0))],
        out_specs=spec,
        compiler_params=pltpu.CompilerParams(
            dimension_semantics=("parallel", "parallel"),
            vmem_limit_bytes=_VMEM_LIMIT),
    )(q.astype(jnp.bfloat16), k.astype(jnp.bfloat16), v.astype(jnp.bfloat16),
      mask.astype(jnp.float32))


def _head_regressor_kernel(f_ref, ww_ref, wb_ref, vw_ref, vb_ref,
                           w1_ref, b1_ref, w2_ref, b2_ref, o_ref):
    """Fused AttentionHead (softmax over the token axis) + 2-layer regressor, all batch rows."""
    B, L, H = f_ref.shape
    f = f_ref[...]                                                           # (B, L, H) bf16
    f2 = f.reshape(B * L, H)
    att = jnp.tanh(jnp.dot(f2, ww_ref[...], preferred_element_type=jnp.float32)
                   + wb_ref[...])                                            # (B*L, H) f32
    # score = att @ V.weight^T + V.bias  (V.weight is (1, H) -> elementwise + lane-reduce)
    score = jnp.sum(att * vw_ref[...], axis=-1, keepdims=True) + vb_ref[...]  # (B*L, 1)
    score = score.reshape(B, L, 1)
    score = score - jnp.max(score, axis=1, keepdims=True)
    p = jnp.exp(score)
    p = p * pl.reciprocal(jnp.sum(p, axis=1, keepdims=True), approx=True)     # softmax over L
    ctx = jnp.sum(p * f.astype(jnp.float32), axis=1)                          # (B, H)
    h1 = jnp.dot(ctx.astype(w1_ref.dtype), w1_ref[...],
                 preferred_element_type=jnp.float32) + b1_ref[...]
    h1 = jnp.maximum(h1, 0.0)
    y = jnp.dot(h1.astype(w2_ref.dtype), w2_ref[...],
                preferred_element_type=jnp.float32) + b2_ref[...]
    o_ref[...] = y.astype(o_ref.dtype)


def head_regressor(features, ww, wb, vw, vb, w1, b1, w2, b2):
    B, L, H = features.shape
    H4 = w1.shape[1]
    NL = w2.shape[1]
    return pl.pallas_call(
        _head_regressor_kernel,
        out_shape=jax.ShapeDtypeStruct((B, NL), jnp.float32),
        in_specs=[pl.BlockSpec((B, L, H), lambda: (0, 0, 0)),
                  pl.BlockSpec((H, H), lambda: (0, 0)),
                  pl.BlockSpec((1, H), lambda: (0, 0)),
                  pl.BlockSpec((1, H), lambda: (0, 0)),
                  pl.BlockSpec((1, 1), lambda: (0, 0)),
                  pl.BlockSpec((H, H4), lambda: (0, 0)),
                  pl.BlockSpec((1, H4), lambda: (0, 0)),
                  pl.BlockSpec((H4, NL), lambda: (0, 0)),
                  pl.BlockSpec((1, NL), lambda: (0, 0))],
        out_specs=pl.BlockSpec((B, NL), lambda: (0, 0)),
    )(features.astype(jnp.bfloat16), ww.astype(jnp.bfloat16),
      wb.reshape(1, H).astype(jnp.float32), vw.reshape(1, H).astype(jnp.float32),
      vb.reshape(1, 1).astype(jnp.float32),
      w1.astype(jnp.bfloat16), b1.reshape(1, H4).astype(jnp.float32),
      w2.astype(jnp.bfloat16), b2.reshape(1, NL).astype(jnp.float32))


# ----------------------------------------------------------------------------
# Parameters (deterministic synthetic init; matmul weights stored (in, out) in bf16)
# ----------------------------------------------------------------------------

def init_params(key, cfg):
    H, I, std = cfg["hidden"], cfg["intermediate"], cfg["init_range"]
    keys = iter(jax.random.split(key, 256))

    def nrm(shape, dtype=jnp.bfloat16):
        return (std * jax.random.normal(next(keys), shape, dtype=jnp.float32)).astype(dtype)

    p = {}
    p["wte"] = nrm((cfg["vocab"], H), jnp.float32).at[cfg["pad_idx"]].set(0.0)
    p["wpe"] = nrm((cfg["max_pos"], H), jnp.float32).at[cfg["pad_idx"]].set(0.0)
    p["wtt"] = nrm((cfg["type_vocab"], H), jnp.float32)
    p["emb_ln_g"] = jnp.ones((H,), jnp.float32)
    p["emb_ln_b"] = jnp.zeros((H,), jnp.float32)

    layers = []
    for _ in range(cfg["layers"]):
        layers.append(dict(
            # fused Q/K/V projection: (H, 3H), biases (3H,)
            qkv_w=jnp.concatenate([nrm((H, H)), nrm((H, H)), nrm((H, H))], axis=1),
            qkv_b=jnp.zeros((3 * H,), jnp.float32),
            o_w=nrm((H, H)), o_b=jnp.zeros((H,), jnp.float32),
            ln1_g=jnp.ones((H,), jnp.float32), ln1_b=jnp.zeros((H,), jnp.float32),
            fi_w=nrm((H, I)), fi_b=jnp.zeros((I,), jnp.float32),
            fo_w=nrm((I, H)), fo_b=jnp.zeros((H,), jnp.float32),
            ln2_g=jnp.ones((H,), jnp.float32), ln2_b=jnp.zeros((H,), jnp.float32),
        ))
    p["layers"] = layers

    p["pool_w"] = nrm((H, H)); p["pool_b"] = jnp.zeros((H,), jnp.float32)

    # AttentionHead: W: Linear(H, H), V: Linear(H, 1)  (V.weight stored as (1, H))
    p["head_w"] = nrm((H, H)); p["head_wb"] = jnp.zeros((H,), jnp.float32)
    p["head_v"] = nrm((1, H), jnp.float32); p["head_vb"] = jnp.zeros((1,), jnp.float32)

    # Regressor: Linear(H, H//4) -> ReLU -> Linear(H//4, num_labels)
    p["r1_w"] = nrm((H, H // 4)); p["r1_b"] = jnp.zeros((H // 4,), jnp.float32)
    p["r2_w"] = nrm((H // 4, cfg["num_labels"]))
    p["r2_b"] = jnp.zeros((cfg["num_labels"],), jnp.float32)
    return p


# ----------------------------------------------------------------------------
# Forward pass (glue in plain JAX, hot paths in Pallas kernels)
# ----------------------------------------------------------------------------

def roberta_encoder(params, input_ids, attention_mask, cfg):
    B, S = input_ids.shape
    H = cfg["hidden"]
    nh = cfg["heads"]
    hd = H // nh
    # RoBERTa position ids can reach pad_idx + S; make sure the position table covers it.
    assert cfg["pad_idx"] + S < cfg["max_pos"], "max_pos too small for this sequence length"

    # --- embeddings (gather is glue; LayerNorm is a Pallas kernel) ---
    pad_mask = (input_ids != cfg["pad_idx"]).astype(jnp.int32)
    position_ids = jnp.cumsum(pad_mask, axis=1) * pad_mask + cfg["pad_idx"]
    token_type_ids = jnp.zeros_like(input_ids)
    emb = (params["wte"][input_ids]
           + params["wpe"][position_ids]
           + params["wtt"][token_type_ids])                                 # (B, S, H) f32
    # feed bf16 to the memory-bound LN pass (LN upcasts to f32 internally)
    x = layernorm(emb.reshape(B * S, H).astype(jnp.bfloat16),
                  params["emb_ln_g"], params["emb_ln_b"])                   # bf16

    # only the CLS rows of the last 4 hidden states are ever consumed (rolling window)
    cls_hist = [x.reshape(B, S, H)[:, :1, :]]

    # extended additive attention mask, kept at (B, 1, S) — no per-head broadcast in HBM
    ext_mask = ((1.0 - attention_mask.astype(jnp.float32)) * -1e9).reshape(B, 1, S)

    scale = 1.0 / math.sqrt(hd)
    for layer in params["layers"]:
        # --- self attention (fused QKV projection; head-major split done once by XLA) ---
        qkv = linear(x, layer["qkv_w"], layer["qkv_b"])                     # (B*S, 3H) bf16
        qkv = qkv.reshape(B, S, 3, nh, hd)
        qkv = jnp.transpose(qkv, (2, 0, 3, 1, 4))                           # (3, B, nh, S, hd)
        ctx = mha(qkv[0], qkv[1], qkv[2], ext_mask, scale=scale)            # (B, nh, S, hd)
        ctx = jnp.transpose(ctx, (0, 2, 1, 3)).reshape(B * S, H)            # head-merge (XLA)
        # output projection with residual-add + LayerNorm fused into the epilogue
        x = linear_add_ln(ctx, layer["o_w"], layer["o_b"], x,
                          layer["ln1_g"], layer["ln1_b"])                   # LN(x + attn_out)
        # --- feed forward (down-projection also fuses residual + LN) ---
        h = linear(x, layer["fi_w"], layer["fi_b"], act="gelu")
        x = linear_add_ln(h, layer["fo_w"], layer["fo_b"], x,
                          layer["ln2_g"], layer["ln2_b"])                   # LN(x + ffn_out)
        cls_hist.append(x.reshape(B, S, H)[:, :1, :])
        cls_hist = cls_hist[-4:]

    last_hidden = x.reshape(B, S, H)                                        # (B, S, H) bf16
    cls = last_hidden[:, 0, :]                                              # (B, H)
    pooler_output = linear(cls, params["pool_w"], params["pool_b"], act="tanh")
    return cls_hist, last_hidden, pooler_output


def model_forward(params, input_ids, attention_mask, cfg):
    cls_hist, last_hidden, pooler_output = roberta_encoder(
        params, input_ids, attention_mask, cfg)
    B, S, H = last_hidden.shape

    # torch.cat([hs[-4][:,0], hs[-3][:,0], hs[-2][:,0], pooler, last_hidden], dim=1)
    sequence_output = jnp.concatenate([
        cls_hist[-4],
        cls_hist[-3],
        cls_hist[-2],
        pooler_output.reshape(B, 1, H).astype(last_hidden.dtype),
        last_hidden,
    ], axis=1)                                                              # (B, 4+S, H)

    # fused AttentionHead + regressor (dropouts are identity at inference)
    logits = head_regressor(sequence_output,
                            params["head_w"], params["head_wb"],
                            params["head_v"], params["head_vb"],
                            params["r1_w"], params["r1_b"],
                            params["r2_w"], params["r2_b"])                 # (B, num_labels)
    return logits, pooler_output


# ----------------------------------------------------------------------------
# Demo
# ----------------------------------------------------------------------------

if __name__ == "__main__":
    cfg = dict(vocab=100, hidden=128, layers=4, heads=4, intermediate=512,
               max_pos=66, type_vocab=1, num_labels=1, pad_idx=1, init_range=0.02)

    key = jax.random.PRNGKey(0)
    pkey, dkey = jax.random.split(key)
    params = init_params(pkey, cfg)

    B, S = 2, 8
    input_ids = jax.random.randint(dkey, (B, S), 2, cfg["vocab"], dtype=jnp.int32)
    attention_mask = jnp.ones((B, S), jnp.int32)

    logits, pooler = model_forward(params, input_ids, attention_mask, cfg)
    jax.block_until_ready((logits, pooler))

    assert logits.shape == (B, cfg["num_labels"])
    assert pooler.shape == (B, cfg["hidden"])
    assert bool(jnp.all(jnp.isfinite(logits.astype(jnp.float32))))
    assert bool(jnp.all(jnp.isfinite(pooler.astype(jnp.float32))))
    print("KERNEL_OK")
</pallas_src>

<mosaic_0001>
module attributes {stable_mosaic.version = 11 : i64} {
  func.func @_layernorm_kernel(%arg0: i32, %arg1: memref<16x128xbf16, #tpu.memory_space<vmem>>, %arg2: memref<1x128xf32, #tpu.memory_space<vmem>>, %arg3: memref<1x128xf32, #tpu.memory_space<vmem>>, %arg4: memref<16x128xbf16, #tpu.memory_space<vmem>>) attributes {dimension_semantics = [#tpu.dimension_semantics<parallel>], iteration_bounds = array<i64: 1>, scalar_prefetch = 0 : i64, scratch_operands = 0 : i64, tpu.core_type = #tpu.core_type<tc>, window_params = [{transform_indices = @transform_0, window_bounds = array<i64: 16, 128>}, {pipeline_mode = #tpu.pipeline_mode<synchronous>, transform_indices = @transform_1, window_bounds = array<i64: 1, 128>}, {pipeline_mode = #tpu.pipeline_mode<synchronous>, transform_indices = @transform_2, window_bounds = array<i64: 1, 128>}, {transform_indices = @transform_3, window_bounds = array<i64: 16, 128>}]} {
    %c0 = arith.constant 0 : index
    %c0_0 = arith.constant 0 : index
    %0 = vector.load %arg1[%c0, %c0_0] : memref<16x128xbf16, #tpu.memory_space<vmem>>, vector<16x128xbf16>
    %1 = arith.extf %0 : vector<16x128xbf16> to vector<16x128xf32>
    %cst = arith.constant dense<0.000000e+00> : vector<16xf32>
    %2 = vector.multi_reduction <add>, %1, %cst [1] : vector<16x128xf32> to vector<16xf32>
    %3 = vector.shape_cast %2 : vector<16xf32> to vector<16x1xf32>
    %cst_1 = arith.constant 1.280000e+02 : f32
    %4 = vector.broadcast %cst_1 : f32 to vector<16x1xf32>
    %5 = arith.divf %3, %4 : vector<16x1xf32>
    %6 = vector.broadcast %5 : vector<16x1xf32> to vector<16x128xf32>
    %7 = arith.subf %1, %6 : vector<16x128xf32>
    %8 = arith.mulf %7, %7 : vector<16x128xf32>
    %cst_2 = arith.constant dense<0.000000e+00> : vector<16xf32>
    %9 = vector.multi_reduction <add>, %8, %cst_2 [1] : vector<16x128xf32> to vector<16xf32>
    %10 = vector.shape_cast %9 : vector<16xf32> to vector<16x1xf32>
    %cst_3 = arith.constant 1.280000e+02 : f32
    %11 = vector.broadcast %cst_3 : f32 to vector<16x1xf32>
    %12 = arith.divf %10, %11 : vector<16x1xf32>
    %13 = vector.broadcast %5 : vector<16x1xf32> to vector<16x128xf32>
    %14 = arith.subf %1, %13 : vector<16x128xf32>
    %cst_4 = arith.constant 9.99999974E-6 : f32
    %15 = vector.broadcast %cst_4 : f32 to vector<16x1xf32>
    %16 = arith.addf %12, %15 : vector<16x1xf32>
    %17 = math.rsqrt %16 : vector<16x1xf32>
    %18 = vector.broadcast %17 : vector<16x1xf32> to vector<16x128xf32>
    %19 = arith.mulf %14, %18 : vector<16x128xf32>
    %c0_5 = arith.constant 0 : index
    %c0_6 = arith.constant 0 : index
    %20 = vector.load %arg2[%c0_5, %c0_6] : memref<1x128xf32, #tpu.memory_space<vmem>>, vector<1x128xf32>
    %21 = vector.broadcast %20 : vector<1x128xf32> to vector<16x128xf32>
    %22 = arith.mulf %19, %21 : vector<16x128xf32>
    %c0_7 = arith.constant 0 : index
    %c0_8 = arith.constant 0 : index
    %23 = vector.load %arg3[%c0_7, %c0_8] : memref<1x128xf32, #tpu.memory_space<vmem>>, vector<1x128xf32>
    %24 = vector.broadcast %23 : vector<1x128xf32> to vector<16x128xf32>
    %25 = arith.addf %22, %24 : vector<16x128xf32>
    %26 = arith.truncf %25 : vector<16x128xf32> to vector<16x128xbf16>
    %c0_9 = arith.constant 0 : index
    %c0_10 = arith.constant 0 : index
    %27 = vector.load %arg4[%c0_9, %c0_10] : memref<16x128xbf16, #tpu.memory_space<vmem>>, vector<16x128xbf16>
    tpu.vector_store %arg4[%c0_9, %c0_10], %26 {strides = array<i32>} : memref<16x128xbf16, #tpu.memory_space<vmem>>, vector<16x128xbf16>,
    return
  }
  func.func @transform_0(%arg0: i32) -> (i32, i32) {
    %c0_i32 = arith.constant 0 : i32
    %c0_i32_0 = arith.constant 0 : i32
    return %arg0, %c0_i32 : i32, i32
  }
  func.func @transform_1(%arg0: i32) -> (i32, i32) {
    %c0_i32 = arith.constant 0 : i32
    %c0_i32_0 = arith.constant 0 : i32
    %c0_i32_1 = arith.constant 0 : i32
    return %c0_i32, %c0_i32_0 : i32, i32
  }
  func.func @transform_2(%arg0: i32) -> (i32, i32) {
    %c0_i32 = arith.constant 0 : i32
    %c0_i32_0 = arith.constant 0 : i32
    %c0_i32_1 = arith.constant 0 : i32
    return %c0_i32, %c0_i32_0 : i32, i32
  }
  func.func @transform_3(%arg0: i32) -> (i32, i32) {
    %c0_i32 = arith.constant 0 : i32
    %c0_i32_0 = arith.constant 0 : i32
    return %arg0, %c0_i32 : i32, i32
  }
}

</mosaic_0001>

<bundles_post_ra>
// kernel: tpu_custom_call.1
= control target key start
LH: loop header
LB: loop body
LE: loop exit
PB: predicated region body
PF: predicated region fallthrough
CT: control target
= control target key end

     0   :  { %8 = vsyncpa [#allocation3], 0  ;;  %s277_s0 = inlined_call_operand.hbm [shape: bf16[16,128], index: 0, kind: input, shape index: {}]   ;;  %s278_s1 = inlined_call_operand.hbm [shape: f32[1,128], index: 1, kind: input, shape index: {}]   ;;  %s279_s2 = inlined_call_operand.vmem [shape: f32[1,128], index: 2, kind: input, shape index: {}]   ;;  %s280_s3 = inlined_call_operand.hbm [shape: bf16[16,128], index: 3, kind: output, shape index: {}]  }
   0x1   :  { %9 = vsyncpa [#allocation6], 0 }
   0x2   :  { %10 = vsyncpa [#allocation4], 0  ;;  %s15_s14 = sshll.u32 %s277_s0, 4  ;;  %s233_s15 = smov [#allocation2]   ;;  %s16_s14 = int_to_ptr.hbm [resolvable:$true] %s15_s14 }
   0x3   :  { %s17_s16 = sshll.u32 %s233_s15, 4  ;;  %s29_s19 = sshll.u32 %s278_s1, 4  ;;  %s18_s16 = int_to_ptr.vmem [resolvable:$true] %s17_s16  ;;  %s30_s19 = int_to_ptr.hbm [resolvable:$true] %s29_s19 }
   0x4   :  { %s234_s20 = smov 64   ;;  %s235_s21 = smov 4  }
   0x5   :  { %23 = dma.hbm_to_vmem [thread:$0]  %s16_s14, 128, %s18_s16, [#allocation3], %s234_s20, %s234_s20, %s235_s21  }
   0x6   :  { %s236_s22 = smov [#allocation5]  }
   0x7   :  { %s31_s23 = sshll.u32 %s236_s22, 4  ;;  %s32_s23 = int_to_ptr.vmem [resolvable:$true] %s31_s23 }
   0x8   :  { %34 = dma.hbm_to_vmem [thread:$0]  %s30_s19, 16, %s32_s23, [#allocation6]  }
   0x9   :  { %227 = dma.done.wait [#allocation3], 128  }
   0xa   :  { %228 = vsyncadd [#allocation3], 4294967168 }
   0xb   :  { %229 = dma.done.wait [#allocation6], 16  }
   0xc   :  { %230 = vsyncadd [#allocation6], 4294967280  ;;  %v133_v0 = vld [vmem:[#allocation2] sm:$0xff]   ;;  %v237_v3 = vmov 128.0   ;;  %v147_v37 = vld [vmem:[#allocation5] ss:$0 sm:$0xff] }
   0xd   :  { %v134_v1 = vunpack.c.l.bf16 %v133_v0  ;;  %v135_v2 = vunpack.c.h.bf16 %v133_v0  ;;  %149 = vrcp.f32 %v237_v3  ;;  %v148_v42 = vld [vmem:[%s279_s2] ss:$0 sm:$0xff]  ;;  %s238_s24 = smov [#allocation7]   ;;  %s118_s28 = sshll.u32 %s280_s3, 4  ;;  %s119_s28 = int_to_ptr.hbm [resolvable:$true] %s118_s28 }
   0xe   :  { %s116_s25 = sshll.u32 %s238_s24, 4  ;;  %s117_s25 = int_to_ptr.vmem [resolvable:$true] %s116_s25 }
   0xf   :  { %49 = vadd.xlane.f32.xlu0 %v134_v1 }
  0x13   :  { %v150_v4 = vpop.eup %149 }
  0x14   :  { %v54_v5 = vmul.f32 128.0, %v150_v4  ;;  %vm58_vm0 = vweird.f32 %v150_v4 }
  0x16   :  { %v55_v6 = vsub.f32 1.0, %v54_v5 }
  0x17   :  { %51 = vadd.xlane.f32.xlu0 %v135_v2 }
  0x18   :  { %v56_v7 = vmul.f32 %v150_v4, %v55_v6 }
  0x1a   :  { %v57_v8 = vadd.f32 %v150_v4, %v56_v7 }
  0x1c   :  { %v59_v9 = vsel %vm58_vm0, %v150_v4, %v57_v8 }
  0x82   :  { %v50_v10 = vpop.xlane.xlu0 %49 }
  0x83   :  { %v60_v11 = vmul.f32 %v59_v9, %v50_v10 }
  0x85   :  { %v62_v12 = vsub.f32 %v134_v1, %v60_v11 }
  0x87   :  { %v64_v13 = vmul.f32 %v62_v12, %v62_v12 }
  0x89   :  { %66 = vadd.xlane.f32.xlu1 %v64_v13 }
  0x8a   :  { %v52_v14 = vpop.xlane.xlu0 %51 }
  0x8b   :  { %v61_v15 = vmul.f32 %v59_v9, %v52_v14 }
  0x8d   :  { %v63_v16 = vsub.f32 %v135_v2, %v61_v15 }
  0x8f   :  { %v65_v17 = vmul.f32 %v63_v16, %v63_v16 }
  0x91   :  { %68 = vadd.xlane.f32.xlu1 %v65_v17 }
  0xfc   :  { %v67_v18 = vpop.xlane.xlu1 %66 }
  0xfd   :  { %v70_v19 = vmul.f32 %v67_v18, %v59_v9 }
  0xff   :  { %v72_v20 = vadd.f32 1e-05, %v70_v19 }
 0x101   :  { %151 = vrsqrt.f32 %v72_v20  ;;  %vm80_vm2 = vweird.f32 %v72_v20 }
 0x104   :  { %v69_v21 = vpop.xlane.xlu1 %68 }
 0x105   :  { %v71_v22 = vmul.f32 %v69_v21, %v59_v9 }
 0x107   :  { %v152_v23 = vpop.eup %151  ;;  %v73_v24 = vadd.f32 1e-05, %v71_v22 }
 0x108   :  { %v75_v25 = vmul.f32 %v152_v23, %v72_v20  ;;  %vm81_vm1 = vweird.f32 %v152_v23 }
 0x109   :  { %153 = vrsqrt.f32 %v73_v24  ;;  %vm82_vm3 = vmor %vm80_vm2, %vm81_vm1  ;;  %vm90_vm5 = vweird.f32 %v73_v24 }
 0x10a   :  { %v76_v26 = vmul.f32 %v152_v23, %v75_v25 }
 0x10c   :  { %v77_v27 = vmul.f32 0.5, %v76_v26 }
 0x10e   :  { %v78_v28 = vsub.f32 1.5, %v77_v27 }
 0x10f   :  { %v154_v29 = vpop.eup %153 }
 0x110   :  { %v79_v30 = vmul.f32 %v152_v23, %v78_v28  ;;  %v85_v31 = vmul.f32 %v154_v29, %v73_v24  ;;  %vm91_vm4 = vweird.f32 %v154_v29 }
 0x111   :  { %vm92_vm6 = vmor %vm90_vm5, %vm91_vm4 }
 0x112   :  { %v86_v32 = vmul.f32 %v154_v29, %v85_v31  ;;  %v83_v33 = vsel %vm82_vm3, %v152_v23, %v79_v30 }
 0x113   :  { %v94_v36 = vmul.f32 %v83_v33, %v62_v12 }
 0x114   :  { %v87_v34 = vmul.f32 0.5, %v86_v32 }
 0x115   :  { %v100_v41 = vmul.f32 %v147_v37, %v94_v36 }
 0x116   :  { %v88_v35 = vsub.f32 1.5, %v87_v34 }
 0x117   :  { %v106_v44 = vadd.f32 %v148_v42, %v100_v41 }
 0x118   :  { %v89_v38 = vmul.f32 %v154_v29, %v88_v35 }
 0x11a   :  { %v93_v39 = vsel %vm92_vm6, %v154_v29, %v89_v38 }
 0x11b   :  { %v95_v40 = vmul.f32 %v93_v39, %v63_v16 }
 0x11d   :  { %v101_v43 = vmul.f32 %v147_v37, %v95_v40 }
 0x11f   :  { %v107_v45 = vadd.f32 %v148_v42, %v101_v43 }
 0x121   :  { %v139_v46 = vpack.c.bf16 %v107_v45, %v106_v44 }
 0x123   :  { %140 = vst [vmem:[#allocation7] sm:$0xff] %v139_v46  }
 0x124   :  { %124 = dma.vmem_to_hbm [thread:$0]  %s117_s25, 128, %s119_s28, [#allocation4], %s234_s20, %s234_s20, %s235_s21  }
 0x125   :  { %231 = dma.done.wait [#allocation4], 128  }
 0x126   :  { %232 = vsyncadd [#allocation4], 4294967168 }
 0x127   :  { %129 = vsyncpa [#allocation3], 1 }
 0x128   :  { %130 = vsyncpa [#allocation6], 1 }
 0x129   :  { %131 = vsyncpa [#allocation4], 1 }

</bundles_post_ra>
